<compile_context>
chip_gen: v7x
topology: tpu7x:2x2x1
jax: 0.10.0
libtpu: 0.0.40
codegen_flags: <defaults>
</compile_context>

<pallas_src>
import jax
import jax.numpy as jnp
from jax.experimental import pallas as pl
from jax.experimental.pallas import tpu as pltpu

MIN_VARIANCE = 1e-3   # keep_variance_fn = clamp(min=MIN_VARIANCE)
LANE = 128
SUBLANE = 8
MAX_BATCH_TILE = 512  # measured: 128-wide tiles ~29% of HBM roofline, 512 ~85%


def _round_up(x, m):
    return ((x + m - 1) // m) * m


def _pad2(x, rows, cols):
    pr, pc = rows - x.shape[0], cols - x.shape[1]
    if pr == 0 and pc == 0:
        return x
    return jnp.pad(x, ((0, pr), (0, pc)))


# ----------------------------------------------------------------------------
# Fused kernel: replays the module chain on in-VMEM tiles.
# Ref order: x_mean, x_var, [per-Linear: W^T bf16, (W^2)^T bf16, bias f32],
#            out_mean, out_var
# ----------------------------------------------------------------------------
def _make_fused_kernel(kinds):
    n_lin = sum(1 for k in kinds if k == "linear")

    def kernel(*refs):
        xm_ref, xv_ref = refs[0], refs[1]
        param_refs = refs[2:2 + 3 * n_lin]
        om_ref, ov_ref = refs[2 + 3 * n_lin], refs[3 + 3 * n_lin]

        m = xm_ref[...]          # (TM, F_pad) mean, f32
        v = xv_ref[...]          # (TM, F_pad) variance, f32
        p = 0
        for kind in kinds:       # unrolled at trace time
            if kind == "linear":
                wt = param_refs[p][...]        # (K_pad, N_pad) bf16, W^T (zero padded)
                wt2 = param_refs[p + 1][...]   # (K_pad, N_pad) bf16, (W^2)^T (squared in f32 on host)
                b = param_refs[p + 2][...]     # (1, N_pad) f32
                p += 3
                m = jnp.dot(m.astype(jnp.bfloat16), wt,
                            preferred_element_type=jnp.float32) + b
                v = jnp.dot(v.astype(jnp.bfloat16), wt2,
                            preferred_element_type=jnp.float32)
                v = jnp.maximum(v, MIN_VARIANCE)          # keep_variance_fn
            else:  # "relu": moment-matched rectified Gaussian
                v_safe = jnp.maximum(v, MIN_VARIANCE)     # guard against var==0 (padding / relu-first)
                inv_std = jax.lax.rsqrt(v_safe)           # EUP; no divide / sqrt
                std = v_safe * inv_std
                div = m * inv_std
                cdf = 0.5 * (1.0 + jax.lax.erf(div * 0.7071067811865476))
                pdf = 0.3989422804014327 * jnp.exp(-0.5 * div * div)
                new_m = m * cdf + std * pdf
                v = (m * m + v_safe) * cdf + m * std * pdf - new_m * new_m
                m = new_m
                v = jnp.maximum(v, MIN_VARIANCE)          # keep_variance_fn (also fixes tiny negatives)
        om_ref[...] = m
        ov_ref[...] = v

    return kernel


# ----------------------------------------------------------------------------
# Builder: pads, sets up BlockSpecs / grid / cost estimate, jits the forward.
# ----------------------------------------------------------------------------
def _build_fused_forward(modules):
    kinds = tuple(m.kind for m in modules)
    for k in kinds:
        if k not in ("linear", "relu"):
            raise ValueError(f"unsupported ADF module kind: {k}")
    linears = [m for m in modules if m.kind == "linear"]
    kernel = _make_fused_kernel(kinds)

    params = []
    for lin in linears:
        params.extend((lin.wt_bf16, lin.wt_sq_bf16, lin.b_padded))
    params = tuple(params)

    def forward(mean, variance, *ps):
        B, F = mean.shape
        if linears:
            assert F == linears[0].in_features, "input feature mismatch"
            f_in_pad = linears[0].in_pad
            f_out = linears[-1].out_features
            f_out_pad = linears[-1].out_pad
        else:  # pure elementwise chain (e.g. only ReLUs)
            f_in_pad = _round_up(F, LANE)
            f_out, f_out_pad = F, _round_up(F, LANE)

        # ---- batch tiling ---------------------------------------------------
        b8 = _round_up(B, SUBLANE)
        tm = min(MAX_BATCH_TILE, b8)
        # Keep >=2 grid steps whenever the batch allows: v7x has 2 TensorCores and a
        # "parallel" axis only shards with >1 step. Cost on v5e/v6e: one extra ~0.35us
        # grid step, negligible.
        if b8 > SUBLANE and -(-b8 // tm) < 2:
            tm = _round_up(-(-b8 // 2), SUBLANE)
        b_pad = _round_up(B, tm)
        grid = (b_pad // tm,)

        # ---- input padding (single fused pad op; skipped when aligned) ------
        mean_p = _pad2(mean.astype(jnp.float32), b_pad, f_in_pad)
        var_p = _pad2(variance.astype(jnp.float32), b_pad, f_in_pad)

        # ---- specs -----------------------------------------------------------
        in_specs = [pl.BlockSpec((tm, f_in_pad), lambda i: (i, 0)),
                    pl.BlockSpec((tm, f_in_pad), lambda i: (i, 0))]
        for lin in linears:
            wspec = pl.BlockSpec((lin.in_pad, lin.out_pad), lambda i: (0, 0))
            in_specs += [wspec, wspec,
                         pl.BlockSpec((1, lin.out_pad), lambda i: (0, 0))]
        out_spec = pl.BlockSpec((tm, f_out_pad), lambda i: (i, 0))

        # ---- cost estimate + VMEM budget (all static Python ints) -----------
        flops, transc = 0, 0
        bytes_accessed = 2 * b_pad * (f_in_pad + f_out_pad) * 4
        weight_vmem = 0
        cur_f, li = f_in_pad, 0
        for kind in kinds:
            if kind == "linear":
                lin = linears[li]; li += 1
                flops += 4 * b_pad * lin.in_pad * lin.out_pad   # mean + var matmuls
                flops += 2 * b_pad * lin.out_pad                # bias add + clamp
                bytes_accessed += 2 * lin.in_pad * lin.out_pad * 2 + lin.out_pad * 4
                weight_vmem += 2 * lin.in_pad * lin.out_pad * 2 + lin.out_pad * 4
                cur_f = lin.out_pad
            else:
                flops += 20 * b_pad * cur_f
                transc += 3 * b_pad * cur_f                     # rsqrt + erf + exp
        max_f = max([f_in_pad, f_out_pad] + [l.out_pad for l in linears] + [LANE])
        vmem_est = (weight_vmem * 2                      # default double-buffering of weights
                    + (2 * f_in_pad + 2 * f_out_pad) * tm * 4 * 2
                    + 8 * tm * max_f * 4                 # elementwise temporaries headroom
                    + (4 << 20))
        vmem_limit = min(64 << 20, max(32 << 20, vmem_est))   # <= 64 MiB: valid on v7x too

        om_p, ov_p = pl.pallas_call(
            kernel,
            grid=grid,
            in_specs=in_specs,
            out_specs=(out_spec, out_spec),
            out_shape=(jax.ShapeDtypeStruct((b_pad, f_out_pad), jnp.float32),
                       jax.ShapeDtypeStruct((b_pad, f_out_pad), jnp.float32)),
            compiler_params=pltpu.CompilerParams(
                dimension_semantics=("parallel",),
                vmem_limit_bytes=vmem_limit),
            cost_estimate=pl.CostEstimate(
                flops=flops, transcendentals=transc, bytes_accessed=bytes_accessed),
        )(mean_p, var_p, *ps)

        if b_pad == B and f_out_pad == f_out:
            return om_p, ov_p
        return om_p[:B, :f_out], ov_p[:B, :f_out]

    jitted = jax.jit(forward)

    def run(mean, variance):
        return jitted(mean, variance, *params)

    return run


# ----------------------------------------------------------------------------
# Modules (same forward semantics as src/adf.py's Linear / ReLU)
# ----------------------------------------------------------------------------
class ADFLinear:
    kind = "linear"

    def __init__(self, key, in_features, out_features):
        kw, kb = jax.random.split(key)
        bound = 1.0 / (in_features ** 0.5)
        self.in_features = in_features
        self.out_features = out_features
        self.in_pad = _round_up(in_features, LANE)
        self.out_pad = _round_up(out_features, LANE)
        self.weight = jax.random.uniform(
            kw, (out_features, in_features), jnp.float32, -bound, bound)
        self.bias = jax.random.uniform(
            kb, (out_features,), jnp.float32, -bound, bound)
        # Pad + transpose ONCE on the host. Zero padding keeps padded rows/cols inert.
        wt_f32 = _pad2(self.weight.T, self.in_pad, self.out_pad)
        self.wt_bf16 = wt_f32.astype(jnp.bfloat16)
        # W^2 computed in f32 FIRST, then cast (squaring bf16 weights would roughly
        # double the relative error on the variance path).
        self.wt_sq_bf16 = (wt_f32 * wt_f32).astype(jnp.bfloat16)
        self.b_padded = _pad2(self.bias.reshape(1, out_features), 1, self.out_pad)
        self._single = None

    def __call__(self, mean, variance):
        if self._single is None:
            self._single = _build_fused_forward([self])
        return self._single(mean, variance)


class ADFReLU:
    kind = "relu"

    def __init__(self):
        self._single = None

    def __call__(self, mean, variance):
        if self._single is None:
            self._single = _build_fused_forward([self])
        return self._single(mean, variance)


class Sequential:
    """JAX/Pallas mirror of adf.Sequential: chains (mean, variance) pairs.

    The whole module chain is fused into a single Pallas kernel so intermediate
    activations never round-trip through HBM.
    """

    def __init__(self, *modules):
        self._modules = list(modules)
        self._fused = _build_fused_forward(self._modules)

    def __len__(self):
        return len(self._modules)

    def __getitem__(self, idx):
        if isinstance(idx, slice):
            return Sequential(*self._modules[idx])
        return self._modules[idx]

    def forward(self, inputs, inputs_variance):
        return self._fused(inputs, inputs_variance)

    __call__ = forward


# ----------------------------------------------------------------------------
# Driver
# ----------------------------------------------------------------------------
if __name__ == "__main__":
    key = jax.random.PRNGKey(0)
    k_in, k_var, k_l1, k_l2 = jax.random.split(key, 4)

    batch, in_features, hidden, out_features = 8, 32, 64, 16

    # input mean + strictly positive input variance
    x_mean = jax.random.normal(k_in, (batch, in_features), jnp.float32)
    x_var = jnp.full((batch, in_features), MIN_VARIANCE, jnp.float32) + \
        jax.random.uniform(k_var, (batch, in_features), jnp.float32, 0.0, 0.1)

    model = Sequential(
        ADFLinear(k_l1, in_features, hidden),
        ADFReLU(),
        ADFLinear(k_l2, hidden, out_features),
    )

    out_mean, out_var = model(x_mean, x_var)
    jax.block_until_ready((out_mean, out_var))

    # sanity checks
    assert out_mean.shape == (batch, out_features)
    assert out_var.shape == (batch, out_features)
    assert bool(jnp.all(out_var >= MIN_VARIANCE))
    assert bool(jnp.all(jnp.isfinite(out_mean))) and bool(jnp.all(jnp.isfinite(out_var)))

    # cross-check fused kernel against per-module (also Pallas) execution
    m_ref, v_ref = x_mean, x_var
    for mod in [model[0], model[1], model[2]]:
        m_ref, v_ref = mod(m_ref, v_ref)
    assert bool(jnp.allclose(out_mean, m_ref, atol=1e-4, rtol=1e-4))
    assert bool(jnp.allclose(out_var, v_ref, atol=1e-4, rtol=1e-4))

    print("KERNEL_OK")
</pallas_src>

<mosaic_0001>
module attributes {stable_mosaic.version = 11 : i64} {
  func.func @kernel(%arg0: i32, %arg1: memref<8x128xf32, #tpu.memory_space<vmem>>, %arg2: memref<8x128xf32, #tpu.memory_space<vmem>>, %arg3: memref<128x128xbf16, #tpu.memory_space<vmem>>, %arg4: memref<128x128xbf16, #tpu.memory_space<vmem>>, %arg5: memref<1x128xf32, #tpu.memory_space<vmem>>, %arg6: memref<128x128xbf16, #tpu.memory_space<vmem>>, %arg7: memref<128x128xbf16, #tpu.memory_space<vmem>>, %arg8: memref<1x128xf32, #tpu.memory_space<vmem>>, %arg9: memref<8x128xf32, #tpu.memory_space<vmem>>, %arg10: memref<8x128xf32, #tpu.memory_space<vmem>>) attributes {dimension_semantics = [#tpu.dimension_semantics<parallel>], iteration_bounds = array<i64: 1>, scalar_prefetch = 0 : i64, scratch_operands = 0 : i64, tpu.core_type = #tpu.core_type<tc>, window_params = [{transform_indices = @transform_0, window_bounds = array<i64: 8, 128>}, {transform_indices = @transform_1, window_bounds = array<i64: 8, 128>}, {pipeline_mode = #tpu.pipeline_mode<synchronous>, transform_indices = @transform_2, window_bounds = array<i64: 128, 128>}, {pipeline_mode = #tpu.pipeline_mode<synchronous>, transform_indices = @transform_3, window_bounds = array<i64: 128, 128>}, {pipeline_mode = #tpu.pipeline_mode<synchronous>, transform_indices = @transform_4, window_bounds = array<i64: 1, 128>}, {pipeline_mode = #tpu.pipeline_mode<synchronous>, transform_indices = @transform_5, window_bounds = array<i64: 128, 128>}, {pipeline_mode = #tpu.pipeline_mode<synchronous>, transform_indices = @transform_6, window_bounds = array<i64: 128, 128>}, {pipeline_mode = #tpu.pipeline_mode<synchronous>, transform_indices = @transform_7, window_bounds = array<i64: 1, 128>}, {transform_indices = @transform_8, window_bounds = array<i64: 8, 128>}, {transform_indices = @transform_9, window_bounds = array<i64: 8, 128>}]} {
    %c0 = arith.constant 0 : index
    %c0_0 = arith.constant 0 : index
    %0 = vector.load %arg1[%c0, %c0_0] : memref<8x128xf32, #tpu.memory_space<vmem>>, vector<8x128xf32>
    %c0_1 = arith.constant 0 : index
    %c0_2 = arith.constant 0 : index
    %1 = vector.load %arg2[%c0_1, %c0_2] : memref<8x128xf32, #tpu.memory_space<vmem>>, vector<8x128xf32>
    %c0_3 = arith.constant 0 : index
    %c0_4 = arith.constant 0 : index
    %2 = vector.load %arg3[%c0_3, %c0_4] : memref<128x128xbf16, #tpu.memory_space<vmem>>, vector<128x128xbf16>
    %c0_5 = arith.constant 0 : index
    %c0_6 = arith.constant 0 : index
    %3 = vector.load %arg4[%c0_5, %c0_6] : memref<128x128xbf16, #tpu.memory_space<vmem>>, vector<128x128xbf16>
    %c0_7 = arith.constant 0 : index
    %c0_8 = arith.constant 0 : index
    %4 = vector.load %arg5[%c0_7, %c0_8] : memref<1x128xf32, #tpu.memory_space<vmem>>, vector<1x128xf32>
    %5 = arith.truncf %0 : vector<8x128xf32> to vector<8x128xbf16>
    %cst = arith.constant dense<0.000000e+00> : vector<8x128xf32>
    %6 = tpu.matmul %5, %2, %cst {dimension_numbers = #tpu.dot_dimension_numbers<[1], [0], [0], [1], [0, 0, 1, 1], [], []>} : vector<8x128xbf16>, vector<128x128xbf16>, vector<8x128xf32> -> vector<8x128xf32>
    %7 = vector.broadcast %4 : vector<1x128xf32> to vector<8x128xf32>
    %8 = arith.addf %6, %7 : vector<8x128xf32>
    %9 = arith.truncf %1 : vector<8x128xf32> to vector<8x128xbf16>
    %cst_9 = arith.constant dense<0.000000e+00> : vector<8x128xf32>
    %10 = tpu.matmul %9, %3, %cst_9 {dimension_numbers = #tpu.dot_dimension_numbers<[1], [0], [0], [1], [0, 0, 1, 1], [], []>} : vector<8x128xbf16>, vector<128x128xbf16>, vector<8x128xf32> -> vector<8x128xf32>
    %cst_10 = arith.constant 1.000000e-03 : f32
    %11 = vector.broadcast %cst_10 : f32 to vector<8x128xf32>
    %12 = arith.maximumf %10, %11 : vector<8x128xf32>
    %cst_11 = arith.constant 1.000000e-03 : f32
    %13 = vector.broadcast %cst_11 : f32 to vector<8x128xf32>
    %14 = arith.maximumf %12, %13 : vector<8x128xf32>
    %15 = math.rsqrt %14 : vector<8x128xf32>
    %16 = arith.mulf %14, %15 : vector<8x128xf32>
    %17 = arith.mulf %8, %15 : vector<8x128xf32>
    %cst_12 = arith.constant 0.707106769 : f32
    %18 = vector.broadcast %cst_12 : f32 to vector<8x128xf32>
    %19 = arith.mulf %17, %18 : vector<8x128xf32>
    %20 = math.erf %19 : vector<8x128xf32>
    %cst_13 = arith.constant 1.000000e+00 : f32
    %21 = vector.broadcast %cst_13 : f32 to vector<8x128xf32>
    %22 = arith.addf %21, %20 : vector<8x128xf32>
    %cst_14 = arith.constant 5.000000e-01 : f32
    %23 = vector.broadcast %cst_14 : f32 to vector<8x128xf32>
    %24 = arith.mulf %23, %22 : vector<8x128xf32>
    %cst_15 = arith.constant -5.000000e-01 : f32
    %25 = vector.broadcast %cst_15 : f32 to vector<8x128xf32>
    %26 = arith.mulf %25, %17 : vector<8x128xf32>
    %27 = arith.mulf %26, %17 : vector<8x128xf32>
    %28 = math.exp %27 : vector<8x128xf32>
    %cst_16 = arith.constant 0.398942292 : f32
    %29 = vector.broadcast %cst_16 : f32 to vector<8x128xf32>
    %30 = arith.mulf %29, %28 : vector<8x128xf32>
    %31 = arith.mulf %8, %24 : vector<8x128xf32>
    %32 = arith.mulf %16, %30 : vector<8x128xf32>
    %33 = arith.addf %31, %32 : vector<8x128xf32>
    %34 = arith.mulf %8, %8 : vector<8x128xf32>
    %35 = arith.addf %34, %14 : vector<8x128xf32>
    %36 = arith.mulf %35, %24 : vector<8x128xf32>
    %37 = arith.mulf %8, %16 : vector<8x128xf32>
    %38 = arith.mulf %37, %30 : vector<8x128xf32>
    %39 = arith.addf %36, %38 : vector<8x128xf32>
    %40 = arith.mulf %33, %33 : vector<8x128xf32>
    %41 = arith.subf %39, %40 : vector<8x128xf32>
    %cst_17 = arith.constant 1.000000e-03 : f32
    %42 = vector.broadcast %cst_17 : f32 to vector<8x128xf32>
    %43 = arith.maximumf %41, %42 : vector<8x128xf32>
    %c0_18 = arith.constant 0 : index
    %c0_19 = arith.constant 0 : index
    %44 = vector.load %arg6[%c0_18, %c0_19] : memref<128x128xbf16, #tpu.memory_space<vmem>>, vector<128x128xbf16>
    %c0_20 = arith.constant 0 : index
    %c0_21 = arith.constant 0 : index
    %45 = vector.load %arg7[%c0_20, %c0_21] : memref<128x128xbf16, #tpu.memory_space<vmem>>, vector<128x128xbf16>
    %c0_22 = arith.constant 0 : index
    %c0_23 = arith.constant 0 : index
    %46 = vector.load %arg8[%c0_22, %c0_23] : memref<1x128xf32, #tpu.memory_space<vmem>>, vector<1x128xf32>
    %47 = arith.truncf %33 : vector<8x128xf32> to vector<8x128xbf16>
    %cst_24 = arith.constant dense<0.000000e+00> : vector<8x128xf32>
    %48 = tpu.matmul %47, %44, %cst_24 {dimension_numbers = #tpu.dot_dimension_numbers<[1], [0], [0], [1], [0, 0, 1, 1], [], []>} : vector<8x128xbf16>, vector<128x128xbf16>, vector<8x128xf32> -> vector<8x128xf32>
    %49 = vector.broadcast %46 : vector<1x128xf32> to vector<8x128xf32>
    %50 = arith.addf %48, %49 : vector<8x128xf32>
    %51 = arith.truncf %43 : vector<8x128xf32> to vector<8x128xbf16>
    %cst_25 = arith.constant dense<0.000000e+00> : vector<8x128xf32>
    %52 = tpu.matmul %51, %45, %cst_25 {dimension_numbers = #tpu.dot_dimension_numbers<[1], [0], [0], [1], [0, 0, 1, 1], [], []>} : vector<8x128xbf16>, vector<128x128xbf16>, vector<8x128xf32> -> vector<8x128xf32>
    %cst_26 = arith.constant 1.000000e-03 : f32
    %53 = vector.broadcast %cst_26 : f32 to vector<8x128xf32>
    %54 = arith.maximumf %52, %53 : vector<8x128xf32>
    %c0_27 = arith.constant 0 : index
    %c0_28 = arith.constant 0 : index
    %55 = vector.load %arg9[%c0_27, %c0_28] : memref<8x128xf32, #tpu.memory_space<vmem>>, vector<8x128xf32>
    tpu.vector_store %arg9[%c0_27, %c0_28], %50 {strides = array<i32>} : memref<8x128xf32, #tpu.memory_space<vmem>>, vector<8x128xf32>,
    %c0_29 = arith.constant 0 : index
    %c0_30 = arith.constant 0 : index
    %56 = vector.load %arg10[%c0_29, %c0_30] : memref<8x128xf32, #tpu.memory_space<vmem>>, vector<8x128xf32>
    tpu.vector_store %arg10[%c0_29, %c0_30], %54 {strides = array<i32>} : memref<8x128xf32, #tpu.memory_space<vmem>>, vector<8x128xf32>,
    return
  }
  func.func @transform_0(%arg0: i32) -> (i32, i32) {
    %c0_i32 = arith.constant 0 : i32
    %c0_i32_0 = arith.constant 0 : i32
    return %arg0, %c0_i32 : i32, i32
  }
  func.func @transform_1(%arg0: i32) -> (i32, i32) {
    %c0_i32 = arith.constant 0 : i32
    %c0_i32_0 = arith.constant 0 : i32
    return %arg0, %c0_i32 : i32, i32
  }
  func.func @transform_2(%arg0: i32) -> (i32, i32) {
    %c0_i32 = arith.constant 0 : i32
    %c0_i32_0 = arith.constant 0 : i32
    %c0_i32_1 = arith.constant 0 : i32
    return %c0_i32, %c0_i32_0 : i32, i32
  }
  func.func @transform_3(%arg0: i32) -> (i32, i32) {
    %c0_i32 = arith.constant 0 : i32
    %c0_i32_0 = arith.constant 0 : i32
    %c0_i32_1 = arith.constant 0 : i32
    return %c0_i32, %c0_i32_0 : i32, i32
  }
  func.func @transform_4(%arg0: i32) -> (i32, i32) {
    %c0_i32 = arith.constant 0 : i32
    %c0_i32_0 = arith.constant 0 : i32
    %c0_i32_1 = arith.constant 0 : i32
    return %c0_i32, %c0_i32_0 : i32, i32
  }
  func.func @transform_5(%arg0: i32) -> (i32, i32) {
    %c0_i32 = arith.constant 0 : i32
    %c0_i32_0 = arith.constant 0 : i32
    %c0_i32_1 = arith.constant 0 : i32
    return %c0_i32, %c0_i32_0 : i32, i32
  }
  func.func @transform_6(%arg0: i32) -> (i32, i32) {
    %c0_i32 = arith.constant 0 : i32
    %c0_i32_0 = arith.constant 0 : i32
    %c0_i32_1 = arith.constant 0 : i32
    return %c0_i32, %c0_i32_0 : i32, i32
  }
  func.func @transform_7(%arg0: i32) -> (i32, i32) {
    %c0_i32 = arith.constant 0 : i32
    %c0_i32_0 = arith.constant 0 : i32
    %c0_i32_1 = arith.constant 0 : i32
    return %c0_i32, %c0_i32_0 : i32, i32
  }
  func.func @transform_8(%arg0: i32) -> (i32, i32) {
    %c0_i32 = arith.constant 0 : i32
    %c0_i32_0 = arith.constant 0 : i32
    return %arg0, %c0_i32 : i32, i32
  }
  func.func @transform_9(%arg0: i32) -> (i32, i32) {
    %c0_i32 = arith.constant 0 : i32
    %c0_i32_0 = arith.constant 0 : i32
    return %arg0, %c0_i32 : i32, i32
  }
}

</mosaic_0001>

<bundles_post_ra>
// kernel: forward.1
= control target key start
LH: loop header
LB: loop body
LE: loop exit
PB: predicated region body
PF: predicated region fallthrough
CT: control target
= control target key end

     0   :  { %15 = vsyncpa [#allocation3], 0  ;;  %s1135_s0 = inlined_call_operand.vmem [shape: f32[8,128], index: 0, kind: input, shape index: {}]   ;;  %s1136_s1 = inlined_call_operand.vmem [shape: f32[8,128], index: 1, kind: input, shape index: {}]   ;;  %s1137_s2 = inlined_call_operand.hbm [shape: bf16[128,128], index: 2, kind: input, shape index: {}]   ;;  %s1138_s3 = inlined_call_operand.hbm [shape: bf16[128,128], index: 3, kind: input, shape index: {}]   ;;  %s1139_s4 = inlined_call_operand.vmem [shape: f32[1,128], index: 4, kind: input, shape index: {}]   ;;  %s1140_s5 = inlined_call_operand.hbm [shape: bf16[128,128], index: 5, kind: input, shape index: {}]   ;;  %s1141_s6 = inlined_call_operand.hbm [shape: bf16[128,128], index: 6, kind: input, shape index: {}]   ;;  %s1142_s7 = inlined_call_operand.vmem [shape: f32[1,128], index: 7, kind: input, shape index: {}]   ;;  %s1143_s8 = inlined_call_operand.hbm [shape: f32[8,128], index: 8, kind: output, shape index: {0}]   ;;  %s1144_s9 = inlined_call_operand.hbm [shape: f32[8,128], index: 9, kind: output, shape index: {1}]  }
   0x1   :  { %16 = vsyncpa [#allocation6], 0 }
   0x2   :  { %17 = vsyncpa [#allocation9], 0 }
   0x3   :  { %18 = vsyncpa [#allocation4], 0 }
   0x4   :  { %19 = vsyncpa [#allocation12], 0  ;;  %s925_s30 = smov [#allocation5]   ;;  %s926_s11 = smov [#allocation2]  }
   0x5   :  { %s41_s10 = sshll.u32 %s925_s30, 4  ;;  %s29_s12 = sshll.u32 %s926_s11, 4  ;;  %s42_s10 = int_to_ptr.vmem [resolvable:$true] %s41_s10  ;;  %s985_s12 = int_to_ptr.vmem [resolvable:$true] %s29_s12 }
   0x6   :  { %s783_s15 = scalar_lea.hbm %s1138_s3, 1024 }
   0x7   :  { %p784_p0 = scmp.ne.s32.totalorder %s1138_s3, %s783_s15  ;;  %p787_p1 = scmp.lt.u32.totalorder %s783_s15, %s1138_s3 }
   0x9   :  { %p789_p2 = pnand %p787_p1, %p784_p0 }
   0xb   :  { %792 = shalt.err (!%p789_p2)
}
   0xc   :  { %s793_s20 = scalar_lea.vmem %s42_s10, 1024  ;;  %p798_p4 = scmp.lt.s32.totalorder %s42_s10, %s42_s10 }
   0xd   :  { %p794_p3 = scmp.ne.s32.totalorder %s42_s10, %s793_s20  ;;  %p799_p5 = scmp.lt.s32.totalorder %s793_s20, %s793_s20 }
   0xf   :  { %p800_p6 = por %p799_p5, %p798_p4 }
  0x11   :  { %p801_p7 = pnand %p800_p6, %p794_p3 }
  0x13   :  { %804 = shalt.err (!%p801_p7)
}
  0x14   :  { %s927_s21 = smov 64   ;;  %s928_s22 = smov 4  }
  0x15   :  { %47 = dma.hbm_to_vmem [thread:$0]  %s1138_s3, 1024, %s42_s10, [#allocation6], %s927_s21, %s927_s21, %s928_s22  }
  0x16   :  { %s805_s27 = scalar_lea.hbm %s1137_s2, 1024 }
  0x17   :  { %p806_p8 = scmp.ne.s32.totalorder %s1137_s2, %s805_s27  ;;  %p809_p9 = scmp.lt.u32.totalorder %s805_s27, %s1137_s2 }
  0x19   :  { %p811_p10 = pnand %p809_p9, %p806_p8 }
  0x1b   :  { %814 = shalt.err (!%p811_p10)
}
  0x1c   :  { %s815_s13 = scalar_lea.vmem %s985_s12, 1024  ;;  %p820_p12 = scmp.lt.s32.totalorder %s985_s12, %s985_s12 }
  0x1d   :  { %p816_p11 = scmp.ne.s32.totalorder %s985_s12, %s815_s13  ;;  %p821_p13 = scmp.lt.s32.totalorder %s815_s13, %s815_s13 }
  0x1f   :  { %p822_p0 = por %p821_p13, %p820_p12 }
  0x21   :  { %p823_p1 = pnand %p822_p0, %p816_p11 }
  0x23   :  { %826 = shalt.err (!%p823_p1)
}
  0x24   :  { %35 = dma.hbm_to_vmem [thread:$0]  %s1137_s2, 1024, %s985_s12, [#allocation3], %s927_s21, %s927_s21, %s928_s22  }
  0x25   :  { %s929_s14 = smov [#allocation7]   ;;  %s930_s16 = smov [#allocation8]  }
  0x26   :  { %s55_s15 = sshll.u32 %s929_s14, 4  ;;  %s67_s17 = sshll.u32 %s930_s16, 4  ;;  %s56_s15 = int_to_ptr.vmem [resolvable:$true] %s55_s15  ;;  %s1022_s17 = int_to_ptr.vmem [resolvable:$true] %s67_s17 }
  0x27   :  { %s827_s20 = scalar_lea.hbm %s1140_s5, 1024 }
  0x28   :  { %p828_p2 = scmp.ne.s32.totalorder %s1140_s5, %s827_s20  ;;  %p831_p3 = scmp.lt.u32.totalorder %s827_s20, %s1140_s5 }
  0x2a   :  { %p833_p4 = pnand %p831_p3, %p828_p2 }
  0x2c   :  { %836 = shalt.err (!%p833_p4)
}
  0x2d   :  { %s837_s2 = scalar_lea.vmem %s56_s15, 1024  ;;  %p842_p6 = scmp.lt.s32.totalorder %s56_s15, %s56_s15 }
  0x2e   :  { %p838_p5 = scmp.ne.s32.totalorder %s56_s15, %s837_s2  ;;  %p843_p7 = scmp.lt.s32.totalorder %s837_s2, %s837_s2 }
  0x30   :  { %p844_p8 = por %p843_p7, %p842_p6 }
  0x32   :  { %p845_p9 = pnand %p844_p8, %p838_p5 }
  0x34   :  { %848 = shalt.err (!%p845_p9)
}
  0x35   :  { %61 = dma.hbm_to_vmem [thread:$0]  %s1140_s5, 1024, %s56_s15, [#allocation6], %s927_s21, %s927_s21, %s928_s22  }
  0x36   :  { %s849_s30 = scalar_lea.hbm %s1141_s6, 1024 }
  0x37   :  { %p850_p10 = scmp.ne.s32.totalorder %s1141_s6, %s849_s30  ;;  %p853_p11 = scmp.lt.u32.totalorder %s849_s30, %s1141_s6 }
  0x39   :  { %p855_p12 = pnand %p853_p11, %p850_p10 }
  0x3b   :  { %858 = shalt.err (!%p855_p12)
}
  0x3c   :  { %s859_s14 = scalar_lea.vmem %s1022_s17, 1024  ;;  %p864_p0 = scmp.lt.s32.totalorder %s1022_s17, %s1022_s17 }
  0x3d   :  { %p860_p13 = scmp.ne.s32.totalorder %s1022_s17, %s859_s14  ;;  %p865_p1 = scmp.lt.s32.totalorder %s859_s14, %s859_s14 }
  0x3f   :  { %p866_p2 = por %p865_p1, %p864_p0 }
  0x41   :  { %p867_p3 = pnand %p866_p2, %p860_p13 }
  0x43   :  { %870 = shalt.err (!%p867_p3)
}
  0x44   :  { %73 = dma.hbm_to_vmem [thread:$0]  %s1141_s6, 1024, %s1022_s17, [#allocation9], %s927_s21, %s927_s21, %s928_s22  }
  0x45   :  { %915 = dma.done.wait [#allocation3], 1024  }
  0x46   :  { %916 = vsyncadd [#allocation3], 4294966272 }
  0x47   :  { %917 = dma.done.wait [#allocation6], 2048  }
  0x48   :  { %918 = vsyncadd [#allocation6], 4294965248 }
  0x49   :  { %919 = dma.done.wait [#allocation9], 1024  }
  0x4a   :  { %920 = vsyncadd [#allocation9], 4294966272  ;;  %v931_v0 = vmov 0.0   ;;  %vm932_vm0 = vmmov 0   ;;  %v745_v1 = vld [vmem:[#allocation2] sm:$0xff]   ;;  %v747_v3 = vld [vmem:[#allocation2 + $0x8] sm:$0xff]  }
  0x4b   :  { %655 = vmatprep.subr.bf16.mxu0 %v931_v0  ;;  %675 = vmatprep.subr.bf16.mxu1 %v931_v0  ;;  %v746_v2 = vld [vmem:[#allocation5] sm:$0xff]   ;;  %v748_v4 = vld [vmem:[#allocation5 + $0x8] sm:$0xff]   ;;  %v749_v5 = vld [vmem:[#allocation2 + $0x10] sm:$0xff]   ;;  %s933_s18 = smov [#allocation10]   ;;  %s934_s20 = smov [#allocation11]  }
  0x4c   :  { %671 = vmatprep.mubr.msk.bf16.mxu0 %vm932_vm0, %v931_v0  ;;  %691 = vmatprep.mubr.msk.bf16.mxu1 %vm932_vm0, %v931_v0  ;;  %v750_v6 = vld [vmem:[#allocation5 + $0x10] sm:$0xff]   ;;  %v751_v7 = vld [vmem:[#allocation2 + $0x18] sm:$0xff]   ;;  %v753_v9 = vld [vmem:[#allocation2 + $0x20] sm:$0xff]   ;;  %s560_s19 = sshll.u32 %s933_s18, 4  ;;  %s570_s23 = sshll.u32 %s934_s20, 4  ;;  %s561_s19 = int_to_ptr.vmem [resolvable:$true] %s560_s19  ;;  %s571_s23 = int_to_ptr.vmem [resolvable:$true] %s570_s23 }
  0x4d   :  { %656 = vmatpush3.bf16.msra.mxu0 %v745_v1  ;;  %676 = vmatpush3.bf16.msra.mxu1 %v746_v2  ;;  %v752_v8 = vld [vmem:[#allocation5 + $0x18] sm:$0xff]   ;;  %v754_v10 = vld [vmem:[#allocation5 + $0x20] sm:$0xff]   ;;  %v755_v11 = vld [vmem:[#allocation2 + $0x28] sm:$0xff]   ;;  %s871_s24 = scalar_lea.vmem %s561_s19, 128  ;;  %p876_p5 = scmp.lt.s32.totalorder %s561_s19, %s561_s19 }
  0x4e   :  { %657 = vmatprep.subr.bf16.mxu0 %v931_v0  ;;  %677 = vmatprep.subr.bf16.mxu1 %v931_v0  ;;  %v756_v12 = vld [vmem:[#allocation5 + $0x28] sm:$0xff]   ;;  %v757_v13 = vld [vmem:[#allocation2 + $0x30] sm:$0xff]   ;;  %v759_v15 = vld [vmem:[#allocation2 + $0x38] sm:$0xff]   ;;  %p872_p4 = scmp.ne.s32.totalorder %s561_s19, %s871_s24  ;;  %p877_p6 = scmp.lt.s32.totalorder %s871_s24, %s871_s24 }
  0x4f   :  { %v758_v14 = vld [vmem:[#allocation5 + $0x30] sm:$0xff]   ;;  %v760_v17 = vld [vmem:[#allocation5 + $0x38] sm:$0xff]   ;;  %v761_v21 = vld [vmem:[#allocation7] sm:$0xff]  }
  0x50   :  { %v89_v16 = vld [vmem:[%s1135_s0] sm:$0xff]  ;;  %v762_v22 = vld [vmem:[#allocation7 + $0x8] sm:$0xff]   ;;  %v763_v23 = vld [vmem:[#allocation8] sm:$0xff]   ;;  %p878_p7 = por %p877_p6, %p876_p5 }
  0x51   :  { %658 = vmatpush3.bf16.msra.mxu0 %v747_v3  ;;  %678 = vmatpush3.bf16.msra.mxu1 %v748_v4  ;;  %v90_v18 = vld [vmem:[%s1136_s1] sm:$0xff]  ;;  %v124_v19 = vpack.c.bf16 %v89_v16, %v89_v16  ;;  %v765_v25 = vld [vmem:[#allocation8 + $0x8] sm:$0xff]   ;;  %v766_v26 = vld [vmem:[#allocation7 + $0x18] sm:$0xff]  }
  0x52   :  { %659 = vmatprep.subr.bf16.mxu0 %v931_v0  ;;  %679 = vmatprep.subr.bf16.mxu1 %v931_v0  ;;  %v219_v20 = vpack.c.bf16 %v90_v18, %v90_v18  ;;  %v764_v24 = vld [vmem:[#allocation7 + $0x10] sm:$0xff]   ;;  %v768_v28 = vld [vmem:[#allocation7 + $0x20] sm:$0xff]   ;;  %v769_v29 = vld [vmem:[#allocation8 + $0x18] sm:$0xff]   ;;  %p879_p8 = pnand %p878_p7, %p872_p4 }
  0x53   :  { %v767_v27 = vld [vmem:[#allocation8 + $0x10] sm:$0xff]   ;;  %v770_v30 = vld [vmem:[#allocation7 + $0x28] sm:$0xff]   ;;  %v771_v31 = vld [vmem:[#allocation8 + $0x20] sm:$0xff]  }
  0x54   :  { %v772_v32 = vld [vmem:[#allocation7 + $0x30] sm:$0xff]   ;;  %v773_v33 = vld [vmem:[#allocation8 + $0x28] sm:$0xff]   ;;  %v774_v34 = vld [vmem:[#allocation7 + $0x38] sm:$0xff]  }
  0x55   :  { %660 = vmatpush3.bf16.msra.mxu0 %v749_v5  ;;  %680 = vmatpush3.bf16.msra.mxu1 %v750_v6  ;;  %v775_v35 = vld [vmem:[#allocation8 + $0x30] sm:$0xff]   ;;  %v776_v36 = vld [vmem:[#allocation8 + $0x38] sm:$0xff]  }
  0x56   :  { %661 = vmatprep.subr.bf16.mxu0 %v931_v0  ;;  %681 = vmatprep.subr.bf16.mxu1 %v931_v0  ;;  %v585_v37 = vld [vmem:[%s1139_s4] ss:$0 sm:$0xff] }
  0x59   :  { %662 = vmatpush3.bf16.msra.mxu0 %v751_v7  ;;  %682 = vmatpush3.bf16.msra.mxu1 %v752_v8 }
  0x5a   :  { %663 = vmatprep.subr.bf16.mxu0 %v931_v0  ;;  %683 = vmatprep.subr.bf16.mxu1 %v931_v0 }
  0x5d   :  { %664 = vmatpush3.bf16.msra.mxu0 %v753_v9  ;;  %684 = vmatpush3.bf16.msra.mxu1 %v754_v10 }
  0x5e   :  { %665 = vmatprep.subr.bf16.mxu0 %v931_v0  ;;  %685 = vmatprep.subr.bf16.mxu1 %v931_v0 }
  0x61   :  { %666 = vmatpush3.bf16.msra.mxu0 %v755_v11  ;;  %686 = vmatpush3.bf16.msra.mxu1 %v756_v12  ;;  %v602_v11 = vld [vmem:[%s1142_s7] ss:$0 sm:$0xff] }
  0x62   :  { %667 = vmatprep.subr.bf16.mxu0 %v931_v0  ;;  %687 = vmatprep.subr.bf16.mxu1 %v931_v0 }
  0x65   :  { %668 = vmatpush3.bf16.msra.mxu0 %v757_v13  ;;  %688 = vmatpush3.bf16.msra.mxu1 %v758_v14 }
  0x66   :  { %669 = vmatprep.subr.bf16.mxu0 %v931_v0  ;;  %689 = vmatprep.subr.bf16.mxu1 %v931_v0 }
  0x69   :  { %670 = vmatpush3.bf16.msra.mxu0 %v759_v15  ;;  %690 = vmatpush3.bf16.msra.mxu1 %v760_v17 }
  0x6a   :  { %695 = vmatprep.subr.bf16.mxu0 %v931_v0  ;;  %715 = vmatprep.subr.bf16.mxu1 %v931_v0 }
  0x6c   :  { %672 = vmatmul.mubr.bf16.vlgmr.msra.gmra.mrb[0].mxu0 %v124_v19  ;;  %692 = vmatmul.mubr.bf16.vlgmr.msra.gmra.mrb[0].mxu1 %v219_v20 }
  0x6d   :  { %711 = vmatprep.mubr.msk.bf16.mxu0 %vm932_vm0, %v931_v0  ;;  %731 = vmatprep.mubr.msk.bf16.mxu1 %vm932_vm0, %v931_v0 }
  0x6e   :  { %696 = vmatpush3.bf16.msra.mxu0 %v761_v21  ;;  %716 = vmatpush3.bf16.msra.mxu1 %v763_v23 }
  0x6f   :  { %697 = vmatprep.subr.bf16.mxu0 %v931_v0  ;;  %717 = vmatprep.subr.bf16.mxu1 %v931_v0 }
  0x72   :  { %698 = vmatpush3.bf16.msra.mxu0 %v762_v22  ;;  %718 = vmatpush3.bf16.msra.mxu1 %v765_v25 }
  0x73   :  { %699 = vmatprep.subr.bf16.mxu0 %v931_v0  ;;  %719 = vmatprep.subr.bf16.mxu1 %v931_v0 }
  0x76   :  { %700 = vmatpush3.bf16.msra.mxu0 %v764_v24  ;;  %720 = vmatpush3.bf16.msra.mxu1 %v767_v27 }
  0x77   :  { %701 = vmatprep.subr.bf16.mxu0 %v931_v0  ;;  %721 = vmatprep.subr.bf16.mxu1 %v931_v0 }
  0x7a   :  { %702 = vmatpush3.bf16.msra.mxu0 %v766_v26  ;;  %722 = vmatpush3.bf16.msra.mxu1 %v769_v29 }
  0x7b   :  { %703 = vmatprep.subr.bf16.mxu0 %v931_v0  ;;  %723 = vmatprep.subr.bf16.mxu1 %v931_v0 }
  0x7e   :  { %704 = vmatpush3.bf16.msra.mxu0 %v768_v28  ;;  %724 = vmatpush3.bf16.msra.mxu1 %v771_v31 }
  0x7f   :  { %705 = vmatprep.subr.bf16.mxu0 %v931_v0  ;;  %725 = vmatprep.subr.bf16.mxu1 %v931_v0 }
  0x82   :  { %706 = vmatpush3.bf16.msra.mxu0 %v770_v30  ;;  %726 = vmatpush3.bf16.msra.mxu1 %v773_v33 }
  0x83   :  { %707 = vmatprep.subr.bf16.mxu0 %v931_v0  ;;  %727 = vmatprep.subr.bf16.mxu1 %v931_v0 }
  0x86   :  { %708 = vmatpush3.bf16.msra.mxu0 %v772_v32  ;;  %728 = vmatpush3.bf16.msra.mxu1 %v775_v35 }
  0x87   :  { %709 = vmatprep.subr.bf16.mxu0 %v931_v0  ;;  %729 = vmatprep.subr.bf16.mxu1 %v931_v0 }
  0x8a   :  { %710 = vmatpush3.bf16.msra.mxu0 %v774_v34  ;;  %730 = vmatpush3.bf16.msra.mxu1 %v776_v36 }
 0x13f   :  { %v213_v38 = vpop.f32.mrb[0].mxu0  ;;  %v302_v40 = vpop.f32.mrb[0].mxu1 }
 0x140   :  { %v214_v39 = vadd.f32 %v585_v37, %v213_v38  ;;  %v673_v41 = vpop.f32.mrb[1].mxu0  ;;  %v308_v42 = vmax.f32 %v302_v40, 0.001  ;;  %v693_v43 = vpop.f32.mrb[1].mxu1 }
 0x141   :  { %v216_v44 = vpop.f32.mrb[2].mxu0  ;;  %v305_v46 = vpop.f32.mrb[2].mxu1 }
 0x142   :  { %v325_v45 = vmul.f32 %v214_v39, %v214_v39  ;;  %v674_v47 = vpop.f32.mrb[3].mxu0  ;;  %v309_v48 = vmax.f32 %v308_v42, 0.001  ;;  %v694_v49 = vpop.f32.mrb[3].mxu1 }
 0x144   :  { %777 = vrsqrt.f32 %v309_v48  ;;  %v326_v50 = vadd.f32 %v325_v45, %v309_v48 }
 0x14e   :  { %v778_v51 = vpop.eup %777 }
 0x14f   :  { %v311_v52 = vmul.f32 %v778_v51, %v309_v48  ;;  %v312_v53 = vmul.f32 %v778_v51, %v214_v39 }
 0x151   :  { %v313_v54 = vmul.f32 0.70710677, %v312_v53  ;;  %v317_v55 = vmul.f32 -0.5, %v312_v53  ;;  %v328_v56 = vmul.f32 %v311_v52, %v214_v39 }
 0x153   :  { %779 = verf.f32 %v313_v54  ;;  %v318_v57 = vmul.f32 %v317_v55, %v312_v53 }
 0x155   :  { %v319_v58 = vmul.f32 1.442695, %v318_v57 }
 0x157   :  { %781 = vpow2.f32 %v319_v58 }
 0x15d   :  { %v780_v59 = vpop.eup %779 }
 0x15e   :  { %v315_v60 = vadd.f32 1.0, %v780_v59 }
 0x160   :  { %v316_v61 = vmul.f32 0.5, %v315_v60 }
 0x161   :  { %v782_v62 = vpop.eup %781 }
 0x162   :  { %v321_v63 = vmul.f32 0.3989423, %v782_v62  ;;  %v327_v0 = vmul.f32 %v326_v50, %v316_v61  ;;  %v322_v1 = vmul.f32 %v316_v61, %v214_v39 }
 0x164   :  { %v323_v2 = vmul.f32 %v321_v63, %v311_v52  ;;  %v329_v3 = vmul.f32 %v328_v56, %v321_v63 }
 0x166   :  { %v330_v4 = vadd.f32 %v329_v3, %v327_v0  ;;  %v324_v5 = vadd.f32 %v323_v2, %v322_v1 }
 0x168   :  { %v367_v6 = vpack.c.bf16 %v324_v5, %v324_v5  ;;  %v331_v7 = vmul.f32 %v324_v5, %v324_v5 }
 0x16a   :  { %712 = vmatmul.mubr.bf16.vlgmr.msra.gmra.mrb[4].mxu0 %v367_v6  ;;  %v332_v8 = vsub.f32 %v330_v4, %v331_v7 }
 0x16c   :  { %v333_v9 = vmax.f32 %v332_v8, 0.001 }
 0x16e   :  { %v462_v10 = vpack.c.bf16 %v333_v9, %v333_v9 }
 0x170   :  { %732 = vmatmul.mubr.bf16.vlgmr.msra.gmra.mrb[4].mxu1 %v462_v10 }
 0x23d   :  { %v456_v12 = vpop.f32.mrb[4].mxu0 }
 0x23e   :  { %v457_v13 = vadd.f32 %v602_v11, %v456_v12  ;;  %v713_v14 = vpop.f32.mrb[5].mxu0 }
 0x23f   :  { %v459_v15 = vpop.f32.mrb[6].mxu0 }
 0x240   :  { %552 = vst [vmem:[#allocation10] sm:$0xff] %v457_v13  ;;  %v714_v16 = vpop.f32.mrb[7].mxu0 }
 0x241   :  { %882 = shalt.err (!%p879_p8)
}
 0x242   :  { %s883_s26 = scalar_lea.hbm %s1143_s8, 128 }
 0x243   :  { %p884_p9 = scmp.ne.s32.totalorder %s1143_s8, %s883_s26  ;;  %p887_p10 = scmp.lt.u32.totalorder %s883_s26, %s1143_s8 }
 0x245   :  { %p889_p11 = pnand %p887_p10, %p884_p9 }
 0x247   :  { %892 = shalt.err (!%p889_p11)
}
 0x248   :  { %563 = dma.vmem_to_hbm [thread:$0]  %s561_s19, 128, %s1143_s8, [#allocation4]   ;;  %v545_v17 = vpop.f32.mrb[4].mxu1 }
 0x249   :  { %v551_v18 = vmax.f32 %v545_v17, 0.001  ;;  %v733_v19 = vpop.f32.mrb[5].mxu1  ;;  %s893_s11 = scalar_lea.vmem %s571_s23, 128  ;;  %p898_p13 = scmp.lt.s32.totalorder %s571_s23, %s571_s23 }
 0x24a   :  { %v548_v20 = vpop.f32.mrb[6].mxu1  ;;  %p894_p12 = scmp.ne.s32.totalorder %s571_s23, %s893_s11  ;;  %p899_p0 = scmp.lt.s32.totalorder %s893_s11, %s893_s11 }
 0x24b   :  { %553 = vst [vmem:[#allocation11] sm:$0xff] %v551_v18  ;;  %v734_v21 = vpop.f32.mrb[7].mxu1 }
 0x24c   :  { %p900_p1 = por %p899_p0, %p898_p13 }
 0x24e   :  { %p901_p2 = pnand %p900_p1, %p894_p12 }
 0x250   :  { %904 = shalt.err (!%p901_p2)
}
 0x251   :  { %s905_s10 = scalar_lea.hbm %s1144_s9, 128 }
 0x252   :  { %p906_p3 = scmp.ne.s32.totalorder %s1144_s9, %s905_s10  ;;  %p909_p4 = scmp.lt.u32.totalorder %s905_s10, %s1144_s9 }
 0x254   :  { %p911_p5 = pnand %p909_p4, %p906_p3 }
 0x256   :  { %914 = shalt.err (!%p911_p5)
}
 0x257   :  { %573 = dma.vmem_to_hbm [thread:$0]  %s571_s23, 128, %s1144_s9, [#allocation12]  }
 0x258   :  { %921 = dma.done.wait [#allocation4], 128  }
 0x259   :  { %922 = vsyncadd [#allocation4], 4294967168 }
 0x25a   :  { %923 = dma.done.wait [#allocation12], 128  }
 0x25b   :  { %924 = vsyncadd [#allocation12], 4294967168 }
 0x25c   :  { %580 = vsyncpa [#allocation3], 1 }
 0x25d   :  { %581 = vsyncpa [#allocation6], 1 }
 0x25e   :  { %582 = vsyncpa [#allocation9], 1 }
 0x25f   :  { %583 = vsyncpa [#allocation4], 1 }
 0x260   :  { %584 = vsyncpa [#allocation12], 1 }

</bundles_post_ra>
